<compile_context>
chip_gen: v5e
topology: v5e:2x2
jax: 0.10.0
libtpu: 0.0.40
codegen_flags: <defaults>
</compile_context>

<pallas_src>
import functools

import jax
import jax.numpy as jnp
from jax.experimental import pallas as pl
from jax.experimental.pallas import tpu as pltpu


def _ste_quantized_k_kernel(x_ref, o_ref, *, cst):
    x = x_ref[...]
    if cst == 1.0:
        # k = 1 specialization: round(x * 1) / 1 == round(x)
        o_ref[...] = jnp.round(x)
    else:
        # Multiply by the reciprocal (constant-folded at trace time) instead of
        # dividing; stays entirely on the VPU.
        o_ref[...] = (jnp.round(x * cst) * (1.0 / cst)).astype(o_ref.dtype)


_LANE = 128
# Per-buffer block cap. Double-buffered input + output => ~4x this in VMEM,
# which stays under v5e's 16 MiB scoped default (and well under v6e/v7x).
_MAX_BLOCK_BYTES = 2 * 1024 * 1024


def _ste_forward(x: jax.Array, k: int) -> jax.Array:
    cst = float(2 ** k - 1)
    orig_shape = x.shape
    dtype = x.dtype
    itemsize = jnp.dtype(dtype).itemsize

    flat = x.reshape(-1)
    n = flat.shape[0]

    # Pad only if the element count is not a multiple of 128 (rare for NN
    # shapes) — avoids a full-tensor HBM copy in the common case.
    n_pad = ((n + _LANE - 1) // _LANE) * _LANE
    if n_pad != n:
        flat = jnp.pad(flat, (0, n_pad - n))

    # Wide, lane-dense rows: pick the largest width (multiple of 128) that
    # divides the element count -> long unmasked vst / long DMA descriptors.
    width = _LANE
    for w in (2048, 1024, 512, 256, 128):
        if n_pad % w == 0:
            width = w
            break
    rows = n_pad // width
    x2d = flat.reshape(rows, width)

    # Sublane multiple by dtype packing: f32 -> 8, bf16 -> 16, int8/fp8 -> 32.
    sub = max(8, 32 // itemsize)

    # Large row tiles (capped by VMEM budget), multiple of the sublane packing.
    cap_rows = max(sub, (_MAX_BLOCK_BYTES // (width * itemsize)) // sub * sub)
    if rows <= cap_rows:
        tile_rows = rows          # small input: one full-extent block
    else:
        tile_rows = cap_rows      # big input: pipelined blocks, ragged tail OK

    grid = (pl.cdiv(rows, tile_rows),)

    out2d = pl.pallas_call(
        functools.partial(_ste_quantized_k_kernel, cst=cst),
        out_shape=jax.ShapeDtypeStruct((rows, width), dtype),
        grid=grid,
        in_specs=[pl.BlockSpec((tile_rows, width), lambda i: (i, 0))],
        out_specs=pl.BlockSpec((tile_rows, width), lambda i: (i, 0)),
        compiler_params=pltpu.CompilerParams(
            dimension_semantics=("parallel",),
        ),
    )(x2d)

    out = out2d.reshape(-1)
    if n_pad != n:
        out = out[:n]
    return out.reshape(orig_shape)


# --- STE wrapper: forward = Pallas kernel, backward = identity gradient ---
@functools.partial(jax.custom_vjp, nondiff_argnums=(1,))
def _ste_quantized_k_vjp(x, k):
    return _ste_forward(x, k)


def _ste_fwd(x, k):
    return _ste_forward(x, k), None


def _ste_bwd(k, _, g):
    # Straight-through estimator: pass the cotangent through unchanged.
    return (g,)


_ste_quantized_k_vjp.defvjp(_ste_fwd, _ste_bwd)


def ste_quantized_k(x: jax.Array, k: int = 1) -> jax.Array:
    """STEQuantizedK forward: round(x * (2^k - 1)) / (2^k - 1), STE gradient."""
    return _ste_quantized_k_vjp(x, int(k))


if __name__ == "__main__":
    key = jax.random.PRNGKey(0)
    # NCHW input, values in [0, 1] as required by the module.
    x = jax.random.uniform(key, (2, 4, 16, 16), dtype=jnp.float32,
                           minval=0.0, maxval=1.0)

    # k = 1 (module default): kernel reduces to round(x); exact match expected.
    y = jax.block_until_ready(ste_quantized_k(x, k=1))
    y_ref = jnp.round(x * 1.0) / 1.0
    assert y.shape == x.shape and y.dtype == x.dtype
    assert jnp.array_equal(y, y_ref)

    # k = 2: general path (multiply + round + reciprocal-scale); allow 1-ULP
    # slack from reciprocal-multiply vs division.
    y2 = jax.block_until_ready(ste_quantized_k(x, k=2))
    y2_ref = jnp.round(x * 3.0) / 3.0
    assert jnp.allclose(y2, y2_ref, atol=1e-6, rtol=1e-6)

    # Non-multiple-of-128 element count exercises the (rare) padding path.
    x_odd = jax.random.uniform(jax.random.PRNGKey(1), (2, 3, 5, 7),
                               dtype=jnp.float32, minval=0.0, maxval=1.0)
    y3 = jax.block_until_ready(ste_quantized_k(x_odd, k=3))
    y3_ref = jnp.round(x_odd * 7.0) / 7.0
    assert y3.shape == x_odd.shape
    assert jnp.allclose(y3, y3_ref, atol=1e-6, rtol=1e-6)

    # STE backward: gradient of sum is identity (all ones), matching the
    # PyTorch _STEQuantizedK.backward.
    g = jax.block_until_ready(
        jax.grad(lambda z: jnp.sum(ste_quantized_k(z, 2)))(x))
    assert jnp.array_equal(g, jnp.ones_like(x))

    print("KERNEL_OK")
</pallas_src>

<mosaic_0001>
module attributes {stable_mosaic.version = 11 : i64} {
  func.func @_ste_quantized_k_kernel(%arg0: i32, %arg1: memref<1x2048xf32, #tpu.memory_space<vmem>>, %arg2: memref<1x2048xf32, #tpu.memory_space<vmem>>) attributes {dimension_semantics = [#tpu.dimension_semantics<parallel>], iteration_bounds = array<i64: 1>, scalar_prefetch = 0 : i64, scratch_operands = 0 : i64, tpu.core_type = #tpu.core_type<tc>, window_params = [{transform_indices = @transform_0, window_bounds = array<i64: 1, 2048>}, {transform_indices = @transform_1, window_bounds = array<i64: 1, 2048>}]} {
    %c0 = arith.constant 0 : index
    %c0_0 = arith.constant 0 : index
    %0 = vector.load %arg1[%c0, %c0_0] : memref<1x2048xf32, #tpu.memory_space<vmem>>, vector<1x2048xf32>
    %1 = math.roundeven %0 : vector<1x2048xf32>
    %c0_1 = arith.constant 0 : index
    %c0_2 = arith.constant 0 : index
    %2 = vector.load %arg2[%c0_1, %c0_2] : memref<1x2048xf32, #tpu.memory_space<vmem>>, vector<1x2048xf32>
    tpu.vector_store %arg2[%c0_1, %c0_2], %1 {strides = array<i32>} : memref<1x2048xf32, #tpu.memory_space<vmem>>, vector<1x2048xf32>,
    return
  }
  func.func @transform_0(%arg0: i32) -> (i32, i32) {
    %c0_i32 = arith.constant 0 : i32
    %c0_i32_0 = arith.constant 0 : i32
    return %arg0, %c0_i32 : i32, i32
  }
  func.func @transform_1(%arg0: i32) -> (i32, i32) {
    %c0_i32 = arith.constant 0 : i32
    %c0_i32_0 = arith.constant 0 : i32
    return %arg0, %c0_i32 : i32, i32
  }
}

</mosaic_0001>

<bundles_post_ra>
// kernel: tpu_custom_call.1
= control target key start
LH: loop header
LB: loop body
LE: loop exit
PB: predicated region body
PF: predicated region fallthrough
CT: control target
= control target key end

     0   :  { %6 = vsyncpa [#allocation3], 0  ;;  %s134_s0 = inlined_call_operand.hbm [shape: f32[1,2048], index: 0, kind: input, shape index: {}]   ;;  %s135_s1 = inlined_call_operand.hbm [shape: f32[1,2048], index: 1, kind: output, shape index: {}]  }
   0x1   :  { %7 = vsyncpa [#allocation4], 0  ;;  %s13_s8 = sshll.u32 %s134_s0, 4  ;;  %s116_s9 = smov [#allocation2]   ;;  %s14_s8 = int_to_ptr.hbm [resolvable:$true] %s13_s8 }
   0x2   :  { %s15_s10 = sshll.u32 %s116_s9, 4  ;;  %s16_s10 = int_to_ptr.vmem [resolvable:$true] %s15_s10 }
   0x3   :  { %18 = dma.hbm_to_vmem [thread:$0]  %s14_s8, 256, %s16_s10, [#allocation3]  }
   0x4   :  { %112 = dma.done.wait [#allocation3], 256  }
   0x5   :  { %113 = vsyncadd [#allocation3], 4294967040  ;;  %v23_v0 = vld [vmem:[#allocation2] sm:$0xff]  ;;  %v24_v1 = vld [vmem:[#allocation2 + $0x8] sm:$0xff]  ;;  %s117_s0 = smov [#allocation5]   ;;  %s36_s14 = sshll.u32 %s135_s1, 4  ;;  %s37_s14 = int_to_ptr.hbm [resolvable:$true] %s36_s14 }
   0x6   :  { %v48_v2 = vcvt.f32.s32 %v23_v0  ;;  %v46_v3 = vand.u32 2147483647, %v23_v0  ;;  %v56_v4 = vcvt.f32.s32 %v24_v1  ;;  %v51_v6 = vand.u32 2147483648, %v23_v0  ;;  %s34_s11 = sshll.u32 %s117_s0, 4  ;;  %s35_s11 = int_to_ptr.vmem [resolvable:$true] %s34_s11 }
   0x7   :  { %v54_v7 = vand.u32 2147483647, %v24_v1  ;;  %v59_v9 = vand.u32 2147483648, %v24_v1 }
   0x8   :  { %v49_v5 = vcvt.s32.f32 %v48_v2  ;;  %v57_v8 = vcvt.s32.f32 %v56_v4  ;;  %vm47_vm0 = vcmp.lt.f32.partialorder %v46_v3, 8388608.0 }
   0x9   :  { %vm55_vm1 = vcmp.lt.f32.partialorder %v54_v7, 8388608.0 }
   0xa   :  { %v50_v10 = vand.u32 2147483647, %v49_v5  ;;  %v58_v11 = vand.u32 2147483647, %v57_v8 }
   0xc   :  { %v52_v12 = vor.u32 %v51_v6, %v50_v10  ;;  %v60_v13 = vor.u32 %v59_v9, %v58_v11 }
   0xe   :  { %v53_v14 = vsel %vm47_vm0, %v52_v12, %v23_v0  ;;  %v61_v15 = vsel %vm55_vm1, %v60_v13, %v24_v1 }
   0xf   :  { %27 = vst [vmem:[#allocation5] sm:$0xff] %v53_v14 }
  0x10   :  { %28 = vst [vmem:[#allocation5 + $0x8] sm:$0xff] %v61_v15 }
  0x11   :  { %39 = dma.vmem_to_hbm [thread:$0]  %s35_s11, 256, %s37_s14, [#allocation4]  }
  0x12   :  { %114 = dma.done.wait [#allocation4], 256  }
  0x13   :  { %115 = vsyncadd [#allocation4], 4294967040 }
  0x14   :  { %44 = vsyncpa [#allocation3], 1 }
  0x15   :  { %45 = vsyncpa [#allocation4], 1 }

</bundles_post_ra>
